<compile_context>
chip_gen: v5e
topology: v5e:2x2
jax: 0.10.0
libtpu: 0.0.40
codegen_flags: <defaults>
</compile_context>

<pallas_src>
import jax
import jax.numpy as jnp
from jax import lax
from jax.experimental import pallas as pl
from jax.experimental.pallas import tpu as pltpu


def _round_up(n: int, m: int) -> int:
    return ((n + m - 1) // m) * m


def bnn_kernel(x_ref, w1_ref, b1_ref, w2_ref, b2_ref, o_ref):
    # linear1 on the MXU in (hid, block_b) orientation so every downstream value is
    # lane-dense: contract w1 (hid, in) dim 1 with x (block_b, in) dim 1 -> (hid, block_b).
    h = lax.dot_general(
        w1_ref[...], x_ref[...],
        dimension_numbers=(((1,), (1,)), ((), ())),
        preferred_element_type=jnp.float32,
    )
    # bias + ReLU on the VPU; b1 is a (hid, 1) column broadcast over lanes.
    # (PyTorch's inplace=True flag has no semantic effect on the forward value.)
    h = jnp.maximum(h + b1_ref[...], 0.0)
    # linear2 (out_features == 1): VPU multiply by the (hid, 1) w2 column and an XLU
    # sublane reduction -> lane-dense (1, block_b) row; avoids an M=1 MXU matmul.
    z = jnp.sum(h * w2_ref[...], axis=0, keepdims=True) + b2_ref[0, 0]
    # sigmoid(z) = 0.5 * (tanh(z/2) + 1): one EUP tanh per vreg, no VPU divide.
    o_ref[...] = (0.5 * (jnp.tanh(0.5 * z) + 1.0)).astype(o_ref.dtype)


def bnn_forward(x, w1, b1, w2, b2, *, block_b=None):
    """Forward pass.  Parameters use PyTorch-native shapes:
       w1 (hid, in), b1 (hid,), w2 (1, hid), b2 (1,)."""
    B, in_dim = x.shape
    hid_dim, in_dim_w = w1.shape
    assert in_dim_w == in_dim and w2.shape == (1, hid_dim)

    # Tiny one-off reshapes of the parameters (do NOT scale with B; x is untouched).
    x = x.astype(jnp.float32)
    w1_f = w1.astype(jnp.float32)                       # (hid, in) — already the NT layout
    b1_col = b1.reshape(hid_dim, 1).astype(jnp.float32)  # (hid, 1) column
    w2_col = w2.reshape(hid_dim, 1).astype(jnp.float32)  # (hid, 1) column
    b2_smem = b2.reshape(1, 1).astype(jnp.float32)       # SMEM scalar

    # Batch tile: lane-padding-aware VMEM budget.
    #   x tile   : f32, in_dim padded to 128 lanes, double-buffered
    #   out tile : (1, block_b) f32, padded to 8 sublanes, double-buffered
    # Budget kept under the 32 MiB scoped-VMEM default (v7x-safe); weights are ~tens of KiB.
    if block_b is None:
        vmem_budget = 24 * 1024 * 1024
        x_row_bytes = 2 * _round_up(in_dim, 128) * 4
        out_row_bytes = 2 * 8 * 4
        block_b = vmem_budget // (x_row_bytes + out_row_bytes)
        block_b = min(block_b, 32 * 1024)  # step overhead is amortized well before this
        # v7x megacore: keep >= 2 grid steps when B is large enough to split.
        block_b = min(block_b, max(8, _round_up(pl.cdiv(B, 2), 8)))
    block_b = int(block_b)
    block_b = max(8, min(block_b, _round_up(B, 8)))
    # Sublane multiple always; lane multiple (unmasked vst) once tiles are big enough.
    block_b = _round_up(block_b, 128) if block_b >= 128 else _round_up(block_b, 8)

    num_tiles = pl.cdiv(B, block_b)  # last tile may be partial; garbage lanes sliced off below

    out = pl.pallas_call(
        bnn_kernel,
        out_shape=jax.ShapeDtypeStruct((num_tiles, block_b), jnp.float32),
        grid=(num_tiles,),
        in_specs=[
            pl.BlockSpec((block_b, in_dim), lambda i: (i, 0)),    # x tile (streamed)
            pl.BlockSpec((hid_dim, in_dim), lambda i: (0, 0)),    # w1 (resident)
            pl.BlockSpec((hid_dim, 1), lambda i: (0, 0)),         # b1 column (resident)
            pl.BlockSpec((hid_dim, 1), lambda i: (0, 0)),         # w2 column (resident)
            pl.BlockSpec(memory_space=pltpu.MemorySpace.SMEM),    # b2 scalar
        ],
        out_specs=pl.BlockSpec((1, block_b), lambda i: (i, 0)),   # lane-dense output row
        compiler_params=pltpu.CompilerParams(
            dimension_semantics=("parallel",),
        ),
    )(x, w1_f, b1_col, w2_col, b2_smem)

    # (num_tiles, block_b) row-major -> flat -> first B valid entries -> (B, 1).
    return out.reshape(num_tiles * block_b)[:B].reshape(B, 1)


def init_params(key, in_dim, hid_dim):
    """Deterministic init mirroring torch.nn.Linear defaults and PyTorch shapes."""
    k1, k2, k3, k4 = jax.random.split(key, 4)
    bnd1 = 1.0 / jnp.sqrt(in_dim)
    bnd2 = 1.0 / jnp.sqrt(hid_dim)
    w1 = jax.random.uniform(k1, (hid_dim, in_dim), jnp.float32, -bnd1, bnd1)
    b1 = jax.random.uniform(k2, (hid_dim,), jnp.float32, -bnd1, bnd1)
    w2 = jax.random.uniform(k3, (1, hid_dim), jnp.float32, -bnd2, bnd2)
    b2 = jax.random.uniform(k4, (1,), jnp.float32, -bnd2, bnd2)
    return w1, b1, w2, b2


if __name__ == "__main__":
    in_dim, hid_dim = 32, 32
    key = jax.random.PRNGKey(0)
    kx, kp = jax.random.split(key)
    w1, b1, w2, b2 = init_params(kp, in_dim, hid_dim)

    def ref_forward(xx):
        h = jnp.maximum(xx @ w1.T + b1, 0.0)
        return jax.nn.sigmoid(h @ w2.T + b2)

    # Small single-tile case (matches the module's intended small-shape usage).
    B = 8
    x = jax.random.normal(kx, (B, in_dim), jnp.float32)
    y = bnn_forward(x, w1, b1, w2, b2)
    jax.block_until_ready(y)
    assert y.shape == (B, 1)
    assert jnp.allclose(y, ref_forward(x), atol=1e-4, rtol=1e-4), "mismatch (single tile)"

    # Multi-tile case: 2 grid steps, lane-dense 128-wide output rows, resident weights.
    B2 = 256
    x2 = jax.random.normal(kx, (B2, in_dim), jnp.float32)
    y2 = bnn_forward(x2, w1, b1, w2, b2)
    jax.block_until_ready(y2)
    assert y2.shape == (B2, 1)
    assert jnp.allclose(y2, ref_forward(x2), atol=1e-4, rtol=1e-4), "mismatch (multi tile)"

    print("KERNEL_OK")
</pallas_src>

<mosaic_0001>
module attributes {stable_mosaic.version = 11 : i64} {
  func.func @bnn_kernel(%arg0: i32, %arg1: memref<8x32xf32, #tpu.memory_space<vmem>>, %arg2: memref<32x32xf32, #tpu.memory_space<vmem>>, %arg3: memref<32x1xf32, #tpu.memory_space<vmem>>, %arg4: memref<32x1xf32, #tpu.memory_space<vmem>>, %arg5: memref<1x1xf32, #tpu.memory_space<smem>>, %arg6: memref<1x8xf32, #tpu.memory_space<vmem>>) attributes {dimension_semantics = [#tpu.dimension_semantics<parallel>], iteration_bounds = array<i64: 1>, scalar_prefetch = 0 : i64, scratch_operands = 0 : i64, tpu.core_type = #tpu.core_type<tc>, window_params = [{transform_indices = @transform_0, window_bounds = array<i64: 8, 32>}, {pipeline_mode = #tpu.pipeline_mode<synchronous>, transform_indices = @transform_1, window_bounds = array<i64: 32, 32>}, {pipeline_mode = #tpu.pipeline_mode<synchronous>, transform_indices = @transform_2, window_bounds = array<i64: 32, 1>}, {pipeline_mode = #tpu.pipeline_mode<synchronous>, transform_indices = @transform_3, window_bounds = array<i64: 32, 1>}, {transform_indices = @transform_4, window_bounds = array<i64: 1, 1>}, {transform_indices = @transform_5, window_bounds = array<i64: 1, 8>}]} {
    %c0 = arith.constant 0 : index
    %c0_0 = arith.constant 0 : index
    %0 = vector.load %arg2[%c0, %c0_0] : memref<32x32xf32, #tpu.memory_space<vmem>>, vector<32x32xf32>
    %c0_1 = arith.constant 0 : index
    %c0_2 = arith.constant 0 : index
    %1 = vector.load %arg1[%c0_1, %c0_2] : memref<8x32xf32, #tpu.memory_space<vmem>>, vector<8x32xf32>
    %cst = arith.constant dense<0.000000e+00> : vector<32x8xf32>
    %2 = tpu.matmul %0, %1, %cst {dimension_numbers = #tpu.dot_dimension_numbers<[1], [1], [0], [0], [0, 0, 1, 0], [], []>} : vector<32x32xf32>, vector<8x32xf32>, vector<32x8xf32> -> vector<32x8xf32>
    %c0_3 = arith.constant 0 : index
    %c0_4 = arith.constant 0 : index
    %3 = vector.load %arg3[%c0_3, %c0_4] : memref<32x1xf32, #tpu.memory_space<vmem>>, vector<32x1xf32>
    %4 = vector.broadcast %3 : vector<32x1xf32> to vector<32x8xf32>
    %5 = arith.addf %2, %4 : vector<32x8xf32>
    %cst_5 = arith.constant 0.000000e+00 : f32
    %6 = vector.broadcast %cst_5 : f32 to vector<32x8xf32>
    %7 = arith.maximumf %5, %6 : vector<32x8xf32>
    %c0_6 = arith.constant 0 : index
    %c0_7 = arith.constant 0 : index
    %8 = vector.load %arg4[%c0_6, %c0_7] : memref<32x1xf32, #tpu.memory_space<vmem>>, vector<32x1xf32>
    %9 = vector.broadcast %8 : vector<32x1xf32> to vector<32x8xf32>
    %10 = arith.mulf %7, %9 : vector<32x8xf32>
    %cst_8 = arith.constant dense<0.000000e+00> : vector<8xf32>
    %11 = vector.multi_reduction <add>, %10, %cst_8 [0] : vector<32x8xf32> to vector<8xf32>
    %12 = vector.shape_cast %11 : vector<8xf32> to vector<1x8xf32>
    %c0_9 = arith.constant 0 : index
    %c0_10 = arith.constant 0 : index
    %13 = memref.load %arg5[%c0_9, %c0_10] : memref<1x1xf32, #tpu.memory_space<smem>>
    %14 = vector.broadcast %13 : f32 to vector<1x8xf32>
    %15 = arith.addf %12, %14 : vector<1x8xf32>
    %cst_11 = arith.constant 5.000000e-01 : f32
    %16 = vector.broadcast %cst_11 : f32 to vector<1x8xf32>
    %17 = arith.mulf %16, %15 : vector<1x8xf32>
    %18 = math.tanh %17 : vector<1x8xf32>
    %cst_12 = arith.constant 1.000000e+00 : f32
    %19 = vector.broadcast %cst_12 : f32 to vector<1x8xf32>
    %20 = arith.addf %18, %19 : vector<1x8xf32>
    %cst_13 = arith.constant 5.000000e-01 : f32
    %21 = vector.broadcast %cst_13 : f32 to vector<1x8xf32>
    %22 = arith.mulf %21, %20 : vector<1x8xf32>
    %c0_14 = arith.constant 0 : index
    %c0_15 = arith.constant 0 : index
    %23 = vector.load %arg6[%c0_14, %c0_15] : memref<1x8xf32, #tpu.memory_space<vmem>>, vector<1x8xf32>
    tpu.vector_store %arg6[%c0_14, %c0_15], %22 {strides = array<i32>} : memref<1x8xf32, #tpu.memory_space<vmem>>, vector<1x8xf32>,
    return
  }
  func.func @transform_0(%arg0: i32) -> (i32, i32) {
    %c0_i32 = arith.constant 0 : i32
    %c0_i32_0 = arith.constant 0 : i32
    return %arg0, %c0_i32 : i32, i32
  }
  func.func @transform_1(%arg0: i32) -> (i32, i32) {
    %c0_i32 = arith.constant 0 : i32
    %c0_i32_0 = arith.constant 0 : i32
    %c0_i32_1 = arith.constant 0 : i32
    return %c0_i32, %c0_i32_0 : i32, i32
  }
  func.func @transform_2(%arg0: i32) -> (i32, i32) {
    %c0_i32 = arith.constant 0 : i32
    %c0_i32_0 = arith.constant 0 : i32
    %c0_i32_1 = arith.constant 0 : i32
    return %c0_i32, %c0_i32_0 : i32, i32
  }
  func.func @transform_3(%arg0: i32) -> (i32, i32) {
    %c0_i32 = arith.constant 0 : i32
    %c0_i32_0 = arith.constant 0 : i32
    %c0_i32_1 = arith.constant 0 : i32
    return %c0_i32, %c0_i32_0 : i32, i32
  }
  func.func @transform_4(%arg0: i32) -> (i32, i32) {
    %c0_i32 = arith.constant 0 : i32
    %c0_i32_0 = arith.constant 0 : i32
    %c0_i32_1 = arith.constant 0 : i32
    return %c0_i32, %c0_i32_0 : i32, i32
  }
  func.func @transform_5(%arg0: i32) -> (i32, i32) {
    %c0_i32 = arith.constant 0 : i32
    %c0_i32_0 = arith.constant 0 : i32
    return %arg0, %c0_i32 : i32, i32
  }
}

</mosaic_0001>

<bundles_post_ra>
// kernel: tpu_custom_call.1
= control target key start
LH: loop header
LB: loop body
LE: loop exit
PB: predicated region body
PF: predicated region fallthrough
CT: control target
= control target key end

     0   :  { %vm51_vm0 = vcmask 261120   ;;  %v208_v1 = vmov 0   ;;  %s297_s0 = inlined_call_operand.vmem [shape: f32[8,32], index: 0, kind: input, shape index: {}]   ;;  %s298_s1 = inlined_call_operand.vmem [shape: f32[32,32], index: 1, kind: input, shape index: {}]   ;;  %s299_s2 = inlined_call_operand.vmem [shape: f32[32,1], index: 2, kind: input, shape index: {}]   ;;  %s300_s3 = inlined_call_operand.vmem [shape: f32[32,1], index: 3, kind: input, shape index: {}]   ;;  %s301_s4 = inlined_call_operand.<no memory space> [shape: f32[1,1], index: 4, kind: input, shape index: {}]   ;;  %s302_s5 = inlined_call_operand.hbm [shape: f32[1,8], index: 5, kind: output, shape index: {}]  }
   0x1   :  { %v26_v0 = vld [vmem:[%s297_s0] sm:$0xff]  ;;  %178 = vset.pattern.permute.xlu1 %v208_v1  ;;  %177 = vset.pattern.permute.xlu0 %v208_v1  ;;  %v29_v2 = vld [vmem:[%s299_s2 + $0x10] sm:$0xff]  ;;  %v23_v5 = vld [vmem:[%s298_s1 + $0x8] sm:$0xff] }
   0x2   :  { %v27_v3 = vld [vmem:[%s299_s2] sm:$0xff]  ;;  %167 = vmatpush.xpose.msk.msra.mxu0 %vm51_vm0, %v26_v0  ;;  %172 = vmatpush.xpose.msk.msra.mxu1 %vm51_vm0, %v26_v0  ;;  %v24_v6 = vld [vmem:[%s298_s1 + $0x10] sm:$0xff]  ;;  %v25_v7 = vld [vmem:[%s298_s1 + $0x18] sm:$0xff] }
   0x3   :  { %v22_v4 = vld [vmem:[%s298_s1] sm:$0xff]  ;;  %173 = vmatpush.xpose.msk.msra.mxu2 %vm51_vm0, %v26_v0  ;;  %174 = vmatpush.xpose.msk.msra.mxu3 %vm51_vm0, %v26_v0 }
   0x4   :  { %43 = vperm.xlu1 %178, %v29_v2   ;;  %33 = vperm.xlu0 %177, %v27_v3  }
   0x5   :  { %11 = vsyncpa [#allocation4], 0  ;;  %168 = vmatmul.msk.f32.vlgmr.msra.gmra.mxu0 %vm51_vm0, %v22_v4  ;;  %169 = vmatmul.msk.f32.vlgmr.msra.gmra.mxu1 %vm51_vm0, %v23_v5  ;;  %v100_v8 = vld [vmem:[%s300_s3] sm:$0xff]  ;;  %v30_v9 = vld [vmem:[%s299_s2 + $0x18] sm:$0xff]  ;;  %vm128_vm1 = vcmask 64512   ;;  %v143_v50 = vstv %s301_s4  ;;  %s209_s17 = smov [#allocation3]  }
   0x6   :  { %170 = vmatmul.msk.f32.vlgmr.msra.gmra.mxu2 %vm51_vm0, %v24_v6  ;;  %171 = vmatmul.msk.f32.vlgmr.msra.gmra.mxu3 %vm51_vm0, %v25_v7  ;;  %v28_v10 = vld [vmem:[%s299_s2 + $0x8] sm:$0xff]  ;;  %v103_v12 = vld [vmem:[%s300_s3 + $0x18] sm:$0xff]  ;;  %v102_v13 = vld [vmem:[%s300_s3 + $0x10] sm:$0xff]  ;;  %s156_s18 = sshll.u32 %s209_s17, 4  ;;  %s158_s21 = sshll.u32 %s302_s5, 4  ;;  %vm149_vm2 = vcmask 57344   ;;  %s157_s18 = int_to_ptr.vmem [resolvable:$true] %s156_s18  ;;  %s159_s21 = int_to_ptr.hbm [resolvable:$true] %s158_s21 }
   0x7   :  { %179 = vset.pattern.permute.xlu2 %v208_v1  ;;  %v101_v11 = vld [vmem:[%s300_s3 + $0x8] sm:$0xff] }
   0x8   :  { %106 = vperm.xlu2 %179, %v100_v8  }
   0xc   :  { %48 = vperm.xlu1 %178, %v30_v9   ;;  %38 = vperm.xlu0 %177, %v28_v10  }
  0x10   :  { %111 = vperm.xlu2 %179, %v101_v11  }
  0x14   :  { %121 = vperm.xlu1 %178, %v103_v12   ;;  %116 = vperm.xlu0 %177, %v102_v13  }
  0x62   :  { %v107_v16 = vpop.permute.xlu2 %106 }
  0x6a   :  { %v112_v25 = vpop.permute.xlu2 %111 }
  0x76   :  { %v34_v14 = vpop.permute.xlu0 %33  ;;  %v44_v15 = vpop.permute.xlu1 %43 }
  0x7e   :  { %v39_v17 = vpop.permute.xlu0 %38  ;;  %v49_v20 = vpop.permute.xlu1 %48 }
  0x82   :  { %v84_v18 = vpop.f32.mrf.mxu0  ;;  %v87_v19 = vpop.f32.mrf.mxu1 }
  0x83   :  { %v85_v21 = vadd.f32 %v84_v18, %v34_v14  ;;  %v88_v22 = vadd.f32 %v87_v19, %v39_v17 }
  0x85   :  { %v96_v23 = vmax.f32 %v85_v21, 0.0  ;;  %v97_v24 = vmax.f32 %v88_v22, 0.0 }
  0x86   :  { %v122_v36 = vpop.permute.xlu1 %121  ;;  %v117_v37 = vpop.permute.xlu0 %116 }
  0x87   :  { %v124_v26 = vmul.f32 %v107_v16, %v96_v23  ;;  %v125_v27 = vmul.f32 %v112_v25, %v97_v24 }
  0x89   :  { %v90_v28 = vpop.f32.mrf.mxu2  ;;  %v93_v29 = vpop.f32.mrf.mxu3  ;;  %v129_v32 = vsel %vm128_vm1, %v124_v26, 0.0  ;;  %v130_v33 = vsel %vm128_vm1, %v125_v27, 0.0 }
  0x8a   :  { %v91_v30 = vadd.f32 %v90_v28, %v44_v15  ;;  %v94_v31 = vadd.f32 %v93_v29, %v49_v20  ;;  %v131_v40 = vadd.f32 %v130_v33, %v129_v32 }
  0x8c   :  { %v98_v34 = vmax.f32 %v91_v30, 0.0  ;;  %v99_v35 = vmax.f32 %v94_v31, 0.0 }
  0x8e   :  { %v126_v38 = vmul.f32 %v117_v37, %v98_v34  ;;  %v127_v39 = vmul.f32 %v122_v36, %v99_v35 }
  0x90   :  { %v132_v41 = vsel %vm128_vm1, %v126_v38, 0.0  ;;  %v134_v43 = vsel %vm128_vm1, %v127_v39, 0.0 }
  0x91   :  { %v133_v42 = vadd.f32 %v132_v41, %v131_v40 }
  0x93   :  { %v135_v44 = vadd.f32 %v134_v43, %v133_v42 }
  0x95   :  { %v136_v45 = vrot.slane %v135_v44, 4 }
  0x97   :  { %v137_v46 = vadd.f32 %v136_v45, %v135_v44 }
  0x99   :  { %v138_v47 = vrot.slane %v137_v46, 2 }
  0x9b   :  { %v139_v48 = vadd.f32 %v138_v47, %v137_v46 }
  0x9d   :  { %v140_v49 = vrot.slane %v139_v48, 1 }
  0x9f   :  { %v141_v51 = vadd.f32 %v140_v49, %v139_v48 }
  0xa1   :  { %v144_v52 = vadd.f32 %v143_v50, %v141_v51 }
  0xa3   :  { %v145_v53 = vmul.f32 0.5, %v144_v52 }
  0xa5   :  { %180 = vtanh.f32 %v145_v53 }
  0xab   :  { %v181_v54 = vpop.eup %180 }
  0xac   :  { %v147_v55 = vadd.f32 1.0, %v181_v54 }
  0xae   :  { %v148_v56 = vmul.f32 0.5, %v147_v55 }
  0xb0   :  { %150 = vst.msk [vmem:[#allocation3] sm:$0x1] %vm149_vm2, %v148_v56 }
  0xb1   :  { %161 = dma.vmem_to_hbm [thread:$0]  %s157_s18, 16, %s159_s21, [#allocation4]  }
  0xb2   :  { %206 = dma.done.wait [#allocation4], 16  }
  0xb3   :  { %207 = vsyncadd [#allocation4], 4294967280 }
  0xb4   :  { %166 = vsyncpa [#allocation4], 1 }

</bundles_post_ra>
